<compile_context>
chip_gen: v7x
topology: tpu7x:2x2x1
jax: 0.10.0
libtpu: 0.0.40
codegen_flags: <defaults>
</compile_context>

<pallas_src>
import jax
import jax.numpy as jnp
from jax.experimental import pallas as pl
from jax.experimental.pallas import tpu as pltpu


# --------------------------------------------------------------------------
# Kernel: one (rows, hwt) tile of the sublane-dense (B*C, HW) view.
# --------------------------------------------------------------------------
def _diffusion_kernel(x0_ref, noise_ref, tab_ref, w_ref, loss_ref):
    noise = noise_ref[...]                       # (rows, hwt)
    tab = tab_ref[...]                           # (rows, 3) fused coefficients
    a = tab[:, 0:1]                              # sqrt_alphas_bar[t]      per row
    s = tab[:, 1:2]                              # sqrt(1 - alphas_bar[t]) per row
    temb = tab[:, 2:3]                           # time embedding          per row

    # q_sample
    xt = a * x0_ref[...] + s * noise             # (rows, hwt)

    # stand-in model: block-diagonal per-batch 1x1 conv (MXU) + time embedding
    pred = jnp.dot(w_ref[...], xt, preferred_element_type=jnp.float32) + temb

    # mse_loss(model(x_t, t), noise, reduction='none')
    d = pred - noise
    loss_ref[...] = d * d


# --------------------------------------------------------------------------
# Tiling / VMEM helpers
# --------------------------------------------------------------------------
def _pick_bt(batch, ch, rows_cap=128):
    """Largest batch tile with bt | B, bt*C sublane-legal and bt*C <= rows_cap."""
    divs = [d for d in range(1, batch + 1) if batch % d == 0]
    legal = [d for d in divs if (d * ch) % 8 == 0 or d == batch]
    capped = [d for d in legal if d * ch <= rows_cap]
    if capped:
        return max(capped)
    return min(legal)


def _pick_hwt(hw, rows, target_block_bytes=4 * 1024 * 1024):
    """Largest multiple-of-128 divisor of hw whose f32 block fits the target."""
    cands = [d for d in range(128, hw + 1, 128) if hw % d == 0]
    if not cands:
        return hw
    fitting = [d for d in cands if rows * d * 4 <= target_block_bytes]
    return max(fitting) if fitting else min(cands)


def _block_vmem_bytes(r, c, itemsize=4):
    """(8,128)-padded VMEM footprint of one f32 block."""
    return (-(-r // 8) * 8) * (-(-c // 128) * 128) * itemsize


# --------------------------------------------------------------------------
# Wrapper
# --------------------------------------------------------------------------
def gaussian_diffusion_forward(x_0, *, beta_1, beta_T, T, key):
    """GaussianDiffusion forward. x_0 is NCHW float32. Returns (loss, aux)."""
    B, C, H, W = x_0.shape
    HW = H * W
    assert HW % 128 == 0, "flattened spatial dim must be lane-aligned (128)"

    # ---- diffusion buffers (as in __init__), plain JAX glue ----------------
    betas = jnp.linspace(beta_1, beta_T, T, dtype=jnp.float32)
    alphas = 1.0 - betas
    alphas_bar = jnp.cumprod(alphas, axis=0)
    sqrt_alphas_bar = jnp.sqrt(alphas_bar)
    sqrt_one_minus_alphas_bar = jnp.sqrt(1.0 - alphas_bar)

    # ---- deterministic stand-in model parameters ----------------------------
    w = (jnp.arange(C * C, dtype=jnp.float32).reshape(C, C) / (C * C) - 0.5) * 0.2
    w = w + jnp.eye(C, dtype=jnp.float32)                         # 1x1 conv (C, C)
    temb_table = jnp.sin(
        jnp.arange(T, dtype=jnp.float32)[:, None] * 0.1 +
        jnp.arange(C, dtype=jnp.float32)[None, :]) * 0.05         # (T, C)

    # ---- random sampling in the wrapper (t ~ randint, noise ~ rand_like) ---
    kt, kn = jax.random.split(key)
    t = jax.random.randint(kt, (B,), 0, T)
    noise = jax.random.uniform(kn, x_0.shape, dtype=jnp.float32)  # Uniform[0,1)

    # ---- "extract": per-row coefficients of the (B*C, HW) view, fused ------
    tab = jnp.stack([
        jnp.repeat(sqrt_alphas_bar[t], C),
        jnp.repeat(sqrt_one_minus_alphas_bar[t], C),
        temb_table[t].reshape(B * C),
    ], axis=1).astype(jnp.float32)                                # (B*C, 3)

    # ---- tiling --------------------------------------------------------------
    bt = _pick_bt(B, C)
    rows = bt * C
    hwt = _pick_hwt(HW, rows)
    num_b = B // bt
    num_h = HW // hwt

    # Guarantee >= 2 grid steps when possible (v7x megacore sharding).
    if num_b * num_h == 1:
        smaller_hw = [d for d in range(128, HW, 128) if HW % d == 0]
        if smaller_hw:
            hwt = max(smaller_hw)
            num_h = HW // hwt
        elif bt > 1:
            smaller_bt = [d for d in range(1, bt) if B % d == 0 and (d * C) % 8 == 0]
            if smaller_bt:
                bt = max(smaller_bt)
                rows = bt * C
                num_b = B // bt

    # Block-diagonal weight = per-batch 1x1 conv on a (rows, hwt) tile.  rows
    # is capped at 128, so this stays <= 64 KiB and MXU work stays negligible.
    w_big = jnp.kron(jnp.eye(bt, dtype=jnp.float32), w)           # (rows, rows)

    x0_2d = x_0.reshape(B * C, HW).astype(jnp.float32)
    noise_2d = noise.reshape(B * C, HW)

    # ---- VMEM accounting (everything is double-buffered by default) --------
    resident = 2 * (3 * _block_vmem_bytes(rows, hwt)     # x0 + noise + loss
                    + _block_vmem_bytes(rows, 3)         # fused coefficients
                    + _block_vmem_bytes(rows, rows))     # conv weight
    vmem_limit = int(min(56 * 1024 * 1024,
                         max(16 * 1024 * 1024, 2 * resident)))

    grid_spec = pltpu.PrefetchScalarGridSpec(
        num_scalar_prefetch=0,
        grid=(num_b, num_h),
        in_specs=[
            pl.BlockSpec((rows, hwt), lambda bi, hj: (bi, hj)),   # x_0
            pl.BlockSpec((rows, hwt), lambda bi, hj: (bi, hj)),   # noise
            pl.BlockSpec((rows, 3), lambda bi, hj: (bi, 0)),      # fused coeffs
            pl.BlockSpec((rows, rows), lambda bi, hj: (0, 0)),    # conv weight
        ],
        out_specs=pl.BlockSpec((rows, hwt), lambda bi, hj: (bi, hj)),
    )

    loss_2d = pl.pallas_call(
        _diffusion_kernel,
        out_shape=jax.ShapeDtypeStruct((B * C, HW), jnp.float32),
        grid_spec=grid_spec,
        compiler_params=pltpu.CompilerParams(
            dimension_semantics=("parallel", "parallel"),
            vmem_limit_bytes=vmem_limit),
    )(x0_2d, noise_2d, tab, w_big)

    aux = dict(t=t, noise=noise, w=w, temb_table=temb_table,
               sqrt_alphas_bar=sqrt_alphas_bar,
               sqrt_one_minus_alphas_bar=sqrt_one_minus_alphas_bar)
    return loss_2d.reshape(B, C, H, W), aux


# --------------------------------------------------------------------------
# Pure-JAX reference (same sampled t / noise), for a tolerance check.
# --------------------------------------------------------------------------
def _reference_loss(x_0, aux):
    B, C, H, W = x_0.shape
    t = aux["t"]
    noise = aux["noise"]
    a = aux["sqrt_alphas_bar"][t].reshape(B, 1, 1, 1)
    s = aux["sqrt_one_minus_alphas_bar"][t].reshape(B, 1, 1, 1)
    x_t = a * x_0 + s * noise
    pred = jnp.einsum("oc,bchw->bohw", aux["w"], x_t,
                      preferred_element_type=jnp.float32)
    pred = pred + aux["temb_table"][t].reshape(B, C, 1, 1)
    return (pred - noise) ** 2


if __name__ == "__main__":
    B, C, H, W = 2, 4, 16, 16
    T = 1000
    beta_1, beta_T = 1e-4, 0.02

    key = jax.random.PRNGKey(0)
    kx, kfwd = jax.random.split(key)
    x_0 = jax.random.normal(kx, (B, C, H, W), dtype=jnp.float32)

    loss, aux = gaussian_diffusion_forward(
        x_0, beta_1=beta_1, beta_T=beta_T, T=T, key=kfwd)
    loss = jax.block_until_ready(loss)

    assert loss.shape == (B, C, H, W)
    assert loss.dtype == jnp.float32
    assert bool(jnp.all(jnp.isfinite(loss)))
    assert bool(jnp.all(loss >= 0.0))

    ref = _reference_loss(x_0, aux)
    max_err = float(jnp.max(jnp.abs(loss - ref)))
    assert bool(jnp.allclose(loss, ref, rtol=3e-2, atol=3e-2)), max_err

    print("KERNEL_OK")
</pallas_src>

<mosaic_0001>
module attributes {stable_mosaic.version = 11 : i64} {
  func.func @_diffusion_kernel(%arg0: i32, %arg1: i32, %arg2: memref<8x128xf32, #tpu.memory_space<vmem>>, %arg3: memref<8x128xf32, #tpu.memory_space<vmem>>, %arg4: memref<8x3xf32, #tpu.memory_space<vmem>>, %arg5: memref<8x8xf32, #tpu.memory_space<vmem>>, %arg6: memref<8x128xf32, #tpu.memory_space<vmem>>) attributes {dimension_semantics = [#tpu.dimension_semantics<parallel>, #tpu.dimension_semantics<parallel>], iteration_bounds = array<i64: 1, 2>, scalar_prefetch = 0 : i64, scratch_operands = 0 : i64, tpu.core_type = #tpu.core_type<tc>, window_params = [{transform_indices = @transform_0, window_bounds = array<i64: 8, 128>}, {transform_indices = @transform_1, window_bounds = array<i64: 8, 128>}, {transform_indices = @transform_2, window_bounds = array<i64: 8, 3>}, {pipeline_mode = #tpu.pipeline_mode<synchronous>, transform_indices = @transform_3, window_bounds = array<i64: 8, 8>}, {transform_indices = @transform_4, window_bounds = array<i64: 8, 128>}]} {
    %c0 = arith.constant 0 : index
    %c0_0 = arith.constant 0 : index
    %0 = vector.load %arg3[%c0, %c0_0] : memref<8x128xf32, #tpu.memory_space<vmem>>, vector<8x128xf32>
    %c0_1 = arith.constant 0 : index
    %c0_2 = arith.constant 0 : index
    %1 = vector.load %arg4[%c0_1, %c0_2] : memref<8x3xf32, #tpu.memory_space<vmem>>, vector<8x3xf32>
    %2 = vector.extract_strided_slice %1 {offsets = [0, 0], sizes = [8, 1], strides = [1, 1]} : vector<8x3xf32> to vector<8x1xf32>
    %3 = vector.extract_strided_slice %1 {offsets = [0, 1], sizes = [8, 1], strides = [1, 1]} : vector<8x3xf32> to vector<8x1xf32>
    %4 = vector.extract_strided_slice %1 {offsets = [0, 2], sizes = [8, 1], strides = [1, 1]} : vector<8x3xf32> to vector<8x1xf32>
    %c0_3 = arith.constant 0 : index
    %c0_4 = arith.constant 0 : index
    %5 = vector.load %arg2[%c0_3, %c0_4] : memref<8x128xf32, #tpu.memory_space<vmem>>, vector<8x128xf32>
    %6 = vector.broadcast %2 : vector<8x1xf32> to vector<8x128xf32>
    %7 = arith.mulf %6, %5 : vector<8x128xf32>
    %8 = vector.broadcast %3 : vector<8x1xf32> to vector<8x128xf32>
    %9 = arith.mulf %8, %0 : vector<8x128xf32>
    %10 = arith.addf %7, %9 : vector<8x128xf32>
    %c0_5 = arith.constant 0 : index
    %c0_6 = arith.constant 0 : index
    %11 = vector.load %arg5[%c0_5, %c0_6] : memref<8x8xf32, #tpu.memory_space<vmem>>, vector<8x8xf32>
    %cst = arith.constant dense<0.000000e+00> : vector<8x128xf32>
    %12 = tpu.matmul %11, %10, %cst {dimension_numbers = #tpu.dot_dimension_numbers<[1], [0], [0], [1], [0, 0, 1, 1], [], []>} : vector<8x8xf32>, vector<8x128xf32>, vector<8x128xf32> -> vector<8x128xf32>
    %13 = vector.broadcast %4 : vector<8x1xf32> to vector<8x128xf32>
    %14 = arith.addf %12, %13 : vector<8x128xf32>
    %15 = arith.subf %14, %0 : vector<8x128xf32>
    %16 = arith.mulf %15, %15 : vector<8x128xf32>
    %c0_7 = arith.constant 0 : index
    %c0_8 = arith.constant 0 : index
    %17 = vector.load %arg6[%c0_7, %c0_8] : memref<8x128xf32, #tpu.memory_space<vmem>>, vector<8x128xf32>
    tpu.vector_store %arg6[%c0_7, %c0_8], %16 {strides = array<i32>} : memref<8x128xf32, #tpu.memory_space<vmem>>, vector<8x128xf32>,
    return
  }
  func.func @transform_0(%arg0: i32, %arg1: i32) -> (i32, i32) {
    %c0_i32 = arith.constant 0 : i32
    return %arg0, %arg1 : i32, i32
  }
  func.func @transform_1(%arg0: i32, %arg1: i32) -> (i32, i32) {
    %c0_i32 = arith.constant 0 : i32
    return %arg0, %arg1 : i32, i32
  }
  func.func @transform_2(%arg0: i32, %arg1: i32) -> (i32, i32) {
    %c0_i32 = arith.constant 0 : i32
    %c0_i32_0 = arith.constant 0 : i32
    return %arg0, %c0_i32 : i32, i32
  }
  func.func @transform_3(%arg0: i32, %arg1: i32) -> (i32, i32) {
    %c0_i32 = arith.constant 0 : i32
    %c0_i32_0 = arith.constant 0 : i32
    %c0_i32_1 = arith.constant 0 : i32
    return %c0_i32, %c0_i32_0 : i32, i32
  }
  func.func @transform_4(%arg0: i32, %arg1: i32) -> (i32, i32) {
    %c0_i32 = arith.constant 0 : i32
    return %arg0, %arg1 : i32, i32
  }
}

</mosaic_0001>

<bundles_post_ra>
// kernel: tpu_custom_call.1
= control target key start
LH: loop header
LB: loop body
LE: loop exit
PB: predicated region body
PF: predicated region fallthrough
CT: control target
= control target key end

     0   :  { %9 = vsyncpa [#allocation3], 0  ;;  %s1037_s0 = inlined_call_operand.hbm [shape: f32[8,256], index: 0, kind: input, shape index: {}]   ;;  %s1038_s1 = inlined_call_operand.hbm [shape: f32[8,256], index: 1, kind: input, shape index: {}]   ;;  %s1039_s2 = inlined_call_operand.vmem [shape: f32[8,3], index: 2, kind: input, shape index: {}]   ;;  %s1040_s3 = inlined_call_operand.vmem [shape: f32[8,8], index: 3, kind: input, shape index: {}]   ;;  %s1041_s4 = inlined_call_operand.hbm [shape: f32[8,256], index: 4, kind: output, shape index: {}]  }
   0x1   :  { %11 = vsyncpa [#allocation3 + $0x1], 0 }
   0x2   :  { %12 = vsyncpa [#allocation6], 0 }
   0x3   :  { %14 = vsyncpa [#allocation6 + $0x1], 0 }
   0x4   :  { %15 = vsyncpa [#allocation4], 0 }
   0x5   :  { %17 = vsyncpa [#allocation4 + $0x1], 0  ;;  %s806_s15 = smov 0   ;;  %s808_s16 = smov 0  }
   0x6   :  { %s810_s17 = smov 0   ;;  %s812_s18 = smov 0  }
   0x7   :  { %s814_s19 = smov 0   ;;  %s816_s20 = smov 0  }
   0x8 LB: > { %s524_s21 = sadd.s32 4294967295, %s771_s20   ;;  %s525_s22 = sadd.s32 4294967294, %s771_s20   ;;  %s771_s20 = sphi %s816_s20, %s23_s20   ;;  %s767_s19 = sphi %s814_s19, %s1061_s19   ;;  %s763_s18 = sphi %s812_s18, %s1060_s18   ;;  %s759_s17 = sphi %s810_s17, %s1059_s17   ;;  %s755_s16 = sphi %s808_s16, %s1058_s16   ;;  %s751_s15 = sphi %s806_s15, %s1057_s15  }
   0x9   : > { %s32_s23 = sadd.s32 1, %s767_s19  ;;  %s44_s24 = sadd.s32 1, %s759_s17 }
   0xa   : > { %p33_p0 = scmp.ge.s32.totalorder %s32_s23, 2  ;;  %p51_p1 = scmp.ne.s32.totalorder %s759_s17, %s755_s16 }
   0xb   : > { %p52_p2 = scmp.eq.s32.totalorder %s771_s20, 0  ;;  %p57_p3 = scmp.ne.s32.totalorder %s755_s16, %s751_s15 }
   0xc   : > { %s1063_s23 = smov (%p33_p0, %s32_s23), 0  ;;  %p58_p5 = scmp.eq.s32.totalorder %s524_s21, 0 }
   0xd   : > { %p847_p4 = por %p52_p2, %p51_p1  ;;  %s40_s26 = ssub.s32 %s767_s19, %s1063_s23 }
   0xe   : > { %p158_p6 = scmp.eq.s32.totalorder %s524_s21, 1  ;;  %p42_p7 = scmp.eq.s32.totalorder %s40_s26, 0 }
   0xf   : > { %p853_p8 = por %p58_p5, %p57_p3  ;;  %p164_p10 = scmp.eq.s32.totalorder %s525_s22, 1 }
  0x10   : > { %p857_p9 = por %p158_p6, %p51_p1  ;;  %p566_p13 = scmp.lt.s32.totalorder %s771_s20, 2 }
  0x11   : > { %s1045_s27 = scalar_select %p853_p8, 1, 0 }
  0x12   : > { %s1046_s28 = scalar_select %p857_p9, 1, 0 }
  0x13   : > { %s862_s29 = scalar_select %p42_p7, %s759_s17, %s44_s24  }
  0x14   : > { %p864_p11 = por %p164_p10, %p57_p3  ;;  %s871_s5 = sand.u32 1, %s759_s17  }
  0x15   : > { %s529_s6 = sshll.u32 %s871_s5, 3  ;;  %s530_s7 = sshll.u32 %s767_s19, 7 }
  0x16   : > { %s1047_s30 = scalar_select %p864_p11, 1, 0 }
  0x17   : > { %s880_s10 = scalar_lea.hbm %s1037_s0, %s530_s7  ;;  %s198_s11 = scalar_lea.vmem [#allocation2], %s529_s6 }
  0x18   : > { %s207_s12 = sshll.u32 %s198_s11, 4  ;;  %p888_p0 = pnand %p566_p13, %p847_p4  ;;  %s884_s12 = int_to_ptr.vmem [resolvable:$true] %s207_s12 }
  0x19   : > { %s195_s14 = scalar_lea.sflag [#allocation3], %s871_s5  ;;  %s625_s21 = scalar_lea.hbm %s880_s10, 128 }
  0x1a   : > { %p626_p3 = scmp.ne.s32.totalorder %s880_s10, %s625_s21  ;;  %p627_p5 = pneg %p888_p0 }
  0x1b   : > { %s630_s25 = scalar_lea.hbm %s1037_s0, 256  ;;  %p631_p4 = scmp.lt.u32.totalorder %s880_s10, %s1037_s0 }
  0x1c   : > { %p628_p6 = pnand %p627_p5, %p626_p3  ;;  %p632_p10 = scmp.lt.u32.totalorder %s630_s25, %s625_s21 }
  0x1d   : > { %p634_p12 = scmp.lt.u32.totalorder %s625_s21, %s880_s10 }
  0x1e   : > { %p629_p7 = pneg %p628_p6  ;;  %p633_p13 = por %p632_p10, %p631_p4 }
  0x20   : > { %p635_p1 = por %p634_p12, %p633_p13 }
  0x22   : > { %p636_p2 = pnand %p635_p1, %p629_p7 }
  0x24   : > { %639 = shalt.err (!%p636_p2)
}
  0x25   : > { %s640_s9 = scalar_lea.vmem %s884_s12, 128  ;;  %s773_s11 = smov [#allocation2]  }
  0x26   : > { %p641_p3 = scmp.ne.s32.totalorder %s884_s12, %s640_s9  ;;  %s645_s22 = sshll.u32 %s773_s11, 4  ;;  %s646_s22 = int_to_ptr.vmem [resolvable:$false] %s645_s22 }
  0x27   : > { %s647_s24 = scalar_lea.vmem %s646_s22, 256  ;;  %p648_p9 = scmp.lt.s32.totalorder %s884_s12, %s646_s22 }
  0x28   : > { %p643_p6 = pnand %p641_p3, %p627_p5  ;;  %p649_p4 = scmp.lt.s32.totalorder %s647_s24, %s640_s9 }
  0x2a   : > { %p644_p11 = pneg %p643_p6  ;;  %p650_p10 = por %p649_p4, %p648_p9 }
  0x2c   : > { %p651_p12 = pnand %p650_p10, %p644_p11 }
  0x2e   : > { %654 = shalt.err (!%p651_p12)
}
  0x2f   : > { %558 = dma.hbm_to_vmem [thread:$0]  (!%p888_p0), %s880_s10, 128, %s884_s12, %s195_s14  }
  0x30   : > { %p1049_p1 = scmp.lt.s32.totalorder %s771_s20, 3  ;;  %p1050_p2 = scmp.ge.s32.totalorder %s771_s20, 1 }
  0x31   : > { %s933_s8 = scalar_lea.hbm %s1038_s1, %s530_s7  ;;  %s218_s9 = scalar_lea.vmem [#allocation5], %s529_s6 }
  0x32   : > { %p924_p7 = pnand %p1050_p2, %p1049_p1  ;;  %s227_s11 = sshll.u32 %s218_s9, 4  ;;  %s228_s11 = int_to_ptr.vmem [resolvable:$true] %s227_s11 }
  0x33   : > { %s215_s10 = scalar_lea.sflag [#allocation6], %s871_s5  ;;  %s655_s12 = scalar_lea.hbm %s933_s8, 128 }
  0x34   : > { %s1051_s21 = scalar_select %p924_p7, 1, 0 }
  0x35   : > { %p656_p9 = scmp.ne.s32.totalorder %s933_s8, %s655_s12  ;;  %s660_s7 = scalar_lea.hbm %s1038_s1, 256 }
  0x36   : > { %p661_p3 = scmp.lt.u32.totalorder %s933_s8, %s1038_s1  ;;  %p662_p6 = scmp.lt.u32.totalorder %s660_s7, %s655_s12 }
  0x37   : > { %p658_p11 = pnand %p656_p9, %p627_p5  ;;  %p664_p10 = scmp.lt.u32.totalorder %s655_s12, %s933_s8 }
  0x38   : > { %p663_p4 = por %p662_p6, %p661_p3 }
  0x39   : > { %p659_p13 = pneg %p658_p11 }
  0x3a   : > { %p665_p12 = por %p664_p10, %p663_p4 }
  0x3c   : > { %p666_p1 = pnand %p665_p12, %p659_p13 }
  0x3e   : > { %669 = shalt.err (!%p666_p1)
}
  0x3f   : > { %s670_s5 = scalar_lea.vmem %s228_s11, 128  ;;  %s774_s6 = smov [#allocation5]  }
  0x40   : > { %p671_p2 = scmp.ne.s32.totalorder %s228_s11, %s670_s5  ;;  %s675_s26 = sshll.u32 %s774_s6, 4  ;;  %s676_s26 = int_to_ptr.vmem [resolvable:$false] %s675_s26 }
  0x41   : > { %s677_s9 = scalar_lea.vmem %s676_s26, 256  ;;  %p678_p8 = scmp.lt.s32.totalorder %s228_s11, %s676_s26 }
  0x42   : > { %p673_p9 = pnand %p671_p2, %p627_p5  ;;  %p679_p7 = scmp.lt.s32.totalorder %s677_s9, %s670_s5 }
  0x44   : > { %p674_p11 = pneg %p673_p9  ;;  %p680_p3 = por %p679_p7, %p678_p8 }
  0x46   : > { %p681_p6 = pnand %p680_p3, %p674_p11 }
  0x48   : > { %684 = shalt.err (!%p681_p6)
}
  0x49   : > { %561 = dma.hbm_to_vmem [thread:$0]  (!%p888_p0), %s933_s8, 128, %s228_s11, %s215_s10  }
  0x4a   : > { %p1052_p13 = scmp.ne.s32.totalorder %s1051_s21, 0 }
  0x4b   : > { %s960_s12 = sand.u32 (!%p1052_p13), 1, %s755_s16   ;;  %p1053_p8 = scmp.ne.s32.totalorder (!%p1052_p13), %s1045_s27, 0 }
  0x4c   : > { %236 = sbr.rel (%p1052_p13) target bundleno = 458 (0x1ca), region = 36  ;;  %s963_s14 = sshll.u32 (!%p1052_p13), %s960_s12, 3 }
  0x4d   : > { %s239_s22 = scalar_lea.sflag (!%p1052_p13), [#allocation3], %s960_s12  ;;  %s242_s7 = scalar_lea.vmem (!%p1052_p13), [#allocation2], %s963_s14 }
  0x53   : > { %738 = dma.done.wait (%p1053_p8), %s239_s22, 128  }
  0x54   : > { %740 = vsyncadd (%p1053_p8), %s239_s22, 4294967168  ;;  %s248_s13 = scalar_lea.sflag [#allocation6], %s960_s12  ;;  %s251_s21 = scalar_lea.vmem [#allocation5], %s963_s14 }
  0x55   : > { %742 = dma.done.wait (%p1053_p8), %s248_s13, 128  }
  0x56   : > { %744 = vsyncadd (%p1053_p8), %s248_s13, 4294967168  ;;  %v775_v0 = vmov 0   ;;  %v290_v1 = vld [vmem:[%s1039_s2] sm:$0xff]  ;;  %v776_v2 = vmov 1   ;;  %v777_v3 = vmov 0.0   ;;  %vm778_vm0 = vmmov 0  }
  0x57   : > { %621 = vset.pattern.permute.xlu0 %v775_v0  ;;  %544 = vmatprep.subr.mxu0 %v777_v3  ;;  %v779_v4 = vmov 2   ;;  %v291_v6 = vld [vmem:[%s242_s7] sm:$0xff]  ;;  %v289_v7 = vld [vmem:[%s251_s21] sm:$0xff]  ;;  %vm309_vm1 = vcmask 64512   ;;  %s539_s24 = sshll.u32 %s763_s18, 7  ;;  %s284_s25 = scalar_lea.vmem [#allocation7], %s963_s14 }
  0x58   : > { %294 = vperm.xlu0 %621, %v290_v1   ;;  %546 = vmatprep.mubr.msk.f32.mxu0 %vm778_vm0, %v777_v3  ;;  %v304_v12 = vld [vmem:[%s1040_s3] sm:$0xff]  ;;  %s402_s5 = sshll.u32 %s284_s25, 4  ;;  %s988_s9 = scalar_lea.hbm %s1041_s4, %s539_s24  ;;  %s990_s5 = int_to_ptr.vmem [resolvable:$true] %s402_s5 }
  0x59   : > { %623 = vset.pattern.permute.xlu1 %v779_v4  ;;  %s387_s22 = scalar_lea.sflag [#allocation4], %s960_s12  ;;  %s685_s7 = scalar_lea.vmem %s990_s5, 128 }
  0x5a   : > { %306 = vperm.xlu1 %623, %v290_v1   ;;  %p686_p0 = scmp.ne.s32.totalorder %s990_s5, %s685_s7  ;;  %p1054_p5 = scmp.ne.s32.totalorder %s1046_s28, 0 }
  0x5b   : > { %s780_s18 = smov [#allocation7]  }
  0x5c   : > { %622 = vset.pattern.permute.xlu0 %v776_v2  ;;  %p687_p7 = pnand %p686_p0, %p1054_p5  ;;  %s689_s14 = sshll.u32 %s780_s18, 4  ;;  %s690_s14 = int_to_ptr.vmem [resolvable:$false] %s689_s14 }
  0x5d   : > { %299 = vperm.xlu0 %622, %v290_v1   ;;  %s691_s13 = scalar_lea.vmem %s690_s14, 256  ;;  %p692_p10 = scmp.lt.s32.totalorder %s990_s5, %s690_s14 }
  0x5e   : > { %p688_p4 = pneg %p687_p7  ;;  %p693_p12 = scmp.lt.s32.totalorder %s691_s13, %s685_s7 }
  0x60   : > { %p694_p1 = por %p693_p12, %p692_p10 }
  0x61   : > { %624 = vset.pattern.permute.xlu0 %v779_v4 }
  0x62   : > { %p695_p2 = pnand %p694_p1, %p688_p4 }
  0xd7   : > { %v295_v5 = vpop.permute.xlu0 %294 }
  0xd8   : > { %v297_v9 = vmul.f32 %v295_v5, %v291_v6 }
  0xd9   : > { %v307_v13 = vpop.permute.xlu1 %306 }
  0xdc   : > { %v300_v8 = vpop.permute.xlu0 %299 }
  0xdd   : > { %v302_v10 = vmul.f32 %v300_v8, %v289_v7 }
  0xdf   : > { %v303_v11 = vadd.f32 %v302_v10, %v297_v9 }
  0xe1   : > { %545 = vmatpush3.msra.mxu0 %v303_v11 }
  0xe2   : > { %547 = vmatmul.mubr.msk.f32.vlgmr.msra.gmra.mrb[0].mxu0 %vm309_vm1, %v304_v12 }
 0x1b5   : > { %v379_v14 = vpop.f32.mrb[0].mxu0 }
 0x1b6   : > { %v380_v15 = vadd.f32 %v379_v14, %v307_v13  ;;  %v548_v16 = vpop.f32.mrb[1].mxu0 }
 0x1b8   : > { %v383_v17 = vsub.f32 %v380_v15, %v289_v7 }
 0x1ba   : > { %v384_v18 = vmul.f32 %v383_v17, %v383_v17 }
 0x1bc   : > { %385 = vst [vmem:[%s284_s25] sm:$0xff] %v384_v18 }
 0x1bd   : > { %698 = shalt.err (!%p695_p2)
}
 0x1be   : > { %s699_s12 = scalar_lea.hbm %s988_s9, 128  ;;  %s703_s11 = scalar_lea.hbm %s1041_s4, 256 }
 0x1bf   : > { %p700_p9 = scmp.ne.s32.totalorder %s988_s9, %s699_s12  ;;  %p704_p6 = scmp.lt.u32.totalorder %s988_s9, %s1041_s4 }
 0x1c0   : > { %p705_p13 = scmp.lt.u32.totalorder %s703_s11, %s699_s12  ;;  %p707_p0 = scmp.lt.u32.totalorder %s699_s12, %s988_s9 }
 0x1c1   : > { %p701_p11 = pnand %p700_p9, %p1054_p5 }
 0x1c2   : > { %p706_p8 = por %p705_p13, %p704_p6 }
 0x1c3   : > { %p702_p3 = pneg %p701_p11 }
 0x1c4   : > { %p708_p7 = por %p707_p0, %p706_p8 }
 0x1c6   : > { %p709_p4 = pnand %p708_p7, %p702_p3 }
 0x1c8   : > { %712 = shalt.err (!%p709_p4)
}
 0x1c9   : > { %553 = dma.vmem_to_hbm [thread:$0]  (%p1054_p5), %s990_s5, 128, %s988_s9, %s387_s22  }
 0x1ca PF: > { %s414_s24 = sand.u32 1, %s751_s15   ;;  %p1055_p10 = scmp.ne.s32.totalorder %s1047_s30, 0 }
 0x1cb   : > { %p1056_p12 = scmp.ge.s32.totalorder %s771_s20, 2  ;;  %s415_s25 = scalar_lea.sflag [#allocation4], %s414_s24 }
 0x1cd   : > { %p563_p1 = pnand %p1056_p12, %p1055_p10 }
 0x1cf   : > { %746 = dma.done.wait (!%p563_p1), %s415_s25, 128  }
 0x1d0   : > { %748 = vsyncadd (!%p563_p1), %s415_s25, 4294967168  ;;  %s23_s20 = sadd.s32 1, %s771_s20   ;;  %s1057_s15 = smov %s755_s16 }
 0x1d1   : > { %p20_p2 = scmp.ge.s32.totalorder %s23_s20, 4   ;;  %s1058_s16 = smov %s759_s17 }
 0x1d2   : > { %s1059_s17 = smov %s862_s29  ;;  %s1060_s18 = smov %s767_s19 }
 0x1d3   : > { %s1061_s19 = smov %s1063_s23  ;;  %22 = sbr.rel (!%p20_p2) target bundleno = 8 (0x8), region = 97 }
 0x1da   :  { %420 = vsyncpa [#allocation3], 1 }
 0x1db   :  { %422 = vsyncpa [#allocation3 + $0x1], 1 }
 0x1dc   :  { %423 = vsyncpa [#allocation6], 1 }
 0x1dd   :  { %425 = vsyncpa [#allocation6 + $0x1], 1 }
 0x1de   :  { %426 = vsyncpa [#allocation4], 1 }
 0x1df   :  { %428 = vsyncpa [#allocation4 + $0x1], 1 }

</bundles_post_ra>
